<compile_context>
chip_gen: v6e
topology: v6e:2x2x1
jax: 0.10.0
libtpu: 0.0.40
codegen_flags: <defaults>
</compile_context>

<pallas_src>
import math

import jax
import jax.numpy as jnp
from jax.experimental import pallas as pl
from jax.experimental.pallas import tpu as pltpu

_INV_PI = 1.0 / math.pi

LANES = 512                 # lane width of each dense row
SUBLANES = 8
GRAIN = LANES * SUBLANES    # 4096 elements: minimal batch tile grain


def _round_up(n, m):
    return ((n + m - 1) // m) * m


def _as_f32(a):
    return a if a.dtype == jnp.float32 else a.astype(jnp.float32)


def _make_mlp_kernel(hidden_size, sontag, alpha=100.0, n_acc=4):
    """Kernel: planar x block (2, R, 512) -> output block (R, 512), VPU only."""
    n_acc = max(1, min(n_acc, hidden_size))

    def kernel(w1_ref, b1_ref, w2_ref, b2_ref, x_ref, o_ref):
        # Dense (R, 512) feature planes: all 8 sublanes of every vreg in use.
        x0 = x_ref[0]
        x1 = x_ref[1]

        accs = [None] * n_acc
        # Unrolled over hidden units (H tiny): scalar*vector VPU work on
        # full-density vregs, hidden under the HBM DMA of the batch tile.
        for j in range(hidden_size):
            h = w1_ref[j] * x0 + w1_ref[hidden_size + j] * x1 + b1_ref[j]
            if sontag:
                h2 = h * h
                h = (jnp.arctan(h) * _INV_PI + 0.5
                     + jnp.cos(h) * pl.reciprocal(alpha * (1.0 + h2),
                                                  approx=True))
            else:
                h = jnp.maximum(h, 0.0)
            term = w2_ref[j] * h
            if j == 0:
                term = term + b2_ref[0]        # fold b2 into first partial
            slot = j % n_acc
            accs[slot] = term if accs[slot] is None else accs[slot] + term

        # Pairwise reduce the independent partial accumulators.
        live = [a for a in accs if a is not None]
        while len(live) > 1:
            nxt = [live[i] + live[i + 1] for i in range(0, len(live) - 1, 2)]
            if len(live) % 2:
                nxt.append(live[-1])
            live = nxt

        o_ref[...] = jax.nn.sigmoid(live[0]).astype(o_ref.dtype)

    return kernel


def rede_neural1_forward(x, w1, b1, w2, b2, *, sontag=False, block_b=262144):
    """x: (B, 2) f32.  w1: (2, H), b1: (H,), w2: (H, 1), b2: (1,).

    Weights are stored (in_features, out_features) — transpose of PyTorch's
    nn.Linear (out, in) convention — so the math is x @ W1 @ W2.
    Returns (B, 1) like the PyTorch module.
    """
    B, F = x.shape
    H = w1.shape[1]
    assert F == 2 and w1.shape == (2, H)
    assert b1.shape == (H,) and w2.shape == (H, 1) and b2.shape == (1,)
    assert block_b % GRAIN == 0

    x = _as_f32(x)
    w1_flat = _as_f32(jnp.reshape(w1, (2 * H,)))     # [w1[0,:], w1[1,:]]
    b1 = _as_f32(b1)
    w2_flat = _as_f32(jnp.reshape(w2, (H,)))
    b2 = _as_f32(b2)

    # Tile sizing: aim for ~8 grid steps (pipelining overlap + v7x megacore)
    # while padding only to one tile grain; cap by block_b for huge batches.
    tb = min(block_b, _round_up(pl.cdiv(B, 8), GRAIN))   # elements per tile
    bp = _round_up(B, tb)                                 # padded batch
    rows_total = bp // LANES
    tile_rows = tb // LANES                               # multiple of 8
    grid = bp // tb

    # Padded planar layout (2, rows, 512): pad first, then a single
    # transpose+reshape (one fused copy under jit); reshape is metadata-only.
    x_pad = jnp.pad(x, ((0, bp - B), (0, 0)))             # (bp, 2)
    xp = x_pad.T.reshape(2, rows_total, LANES)            # (2, rows, 512)

    smem = pl.BlockSpec(memory_space=pltpu.MemorySpace.SMEM)
    kernel = _make_mlp_kernel(H, sontag)

    yt = pl.pallas_call(
        kernel,
        out_shape=jax.ShapeDtypeStruct((rows_total, LANES), jnp.float32),
        grid=(grid,),
        in_specs=[
            smem,                                            # w1 flat (2H,)
            smem,                                            # b1 (H,)
            smem,                                            # w2 flat (H,)
            smem,                                            # b2 (1,)
            pl.BlockSpec((2, tile_rows, LANES), lambda i: (0, i, 0)),
        ],
        out_specs=pl.BlockSpec((tile_rows, LANES), lambda i: (i, 0)),
        compiler_params=pltpu.CompilerParams(
            dimension_semantics=("parallel",)),
    )(w1_flat, b1, w2_flat, b2, xp)

    # Metadata-only flatten + one contiguous slice to drop the padded tail.
    return yt.reshape(bp)[:B].reshape(B, 1)


def init_params(key, hidden_size=10):
    """Deterministic init mimicking nn.Linear's U(-1/sqrt(fan_in), 1/sqrt(fan_in))."""
    k1, k2, k3, k4 = jax.random.split(key, 4)
    bound1 = 1.0 / math.sqrt(2.0)
    bound2 = 1.0 / math.sqrt(hidden_size)
    # Stored as (in, out) — transpose of PyTorch's (out, in).
    w1 = jax.random.uniform(k1, (2, hidden_size), jnp.float32, -bound1, bound1)
    b1 = jax.random.uniform(k2, (hidden_size,), jnp.float32, -bound1, bound1)
    w2 = jax.random.uniform(k3, (hidden_size, 1), jnp.float32, -bound2, bound2)
    b2 = jax.random.uniform(k4, (1,), jnp.float32, -bound2, bound2)
    return w1, b1, w2, b2


def _reference(x, w1, b1, w2, b2, *, sontag):
    h = x @ w1 + b1
    if sontag:
        h = jnp.arctan(h) / math.pi + 0.5 + jnp.cos(h) / (100.0 * (1.0 + h * h))
    else:
        h = jnp.maximum(h, 0.0)
    return jax.nn.sigmoid(h @ w2 + b2)


if __name__ == "__main__":
    key = jax.random.PRNGKey(0)
    kx, kp, kx2 = jax.random.split(key, 3)

    hidden_size = 10
    w1, b1, w2, b2 = init_params(kp, hidden_size)

    fwd = jax.jit(rede_neural1_forward, static_argnames=("sontag", "block_b"))

    # Small batch, default module config (sontag=False -> ReLU activation).
    batch = 8
    x = jax.random.normal(kx, (batch, 2), jnp.float32)
    out = jax.block_until_ready(fwd(x, w1, b1, w2, b2, sontag=False))
    ref = _reference(x, w1, b1, w2, b2, sontag=False)
    assert out.shape == (batch, 1)
    assert jnp.allclose(out, ref, atol=1e-5, rtol=1e-5)

    # Sontag-activation variant (approx reciprocal -> slightly looser tol).
    out_s = jax.block_until_ready(fwd(x, w1, b1, w2, b2, sontag=True))
    ref_s = _reference(x, w1, b1, w2, b2, sontag=True)
    assert jnp.allclose(out_s, ref_s, atol=1e-4, rtol=1e-4)

    # Multi-tile grid + padding path: B=10000 -> tile=4096 elems, grid=3.
    x_big = jax.random.normal(kx2, (10000, 2), jnp.float32)
    out_big = jax.block_until_ready(fwd(x_big, w1, b1, w2, b2, sontag=False))
    ref_big = _reference(x_big, w1, b1, w2, b2, sontag=False)
    assert out_big.shape == (10000, 1)
    assert jnp.allclose(out_big, ref_big, atol=1e-5, rtol=1e-5)

    print("KERNEL_OK")
</pallas_src>

<mosaic_0001>
module attributes {stable_mosaic.version = 11 : i64} {
  func.func @kernel(%arg0: i32, %arg1: memref<20xf32, #tpu.memory_space<smem>>, %arg2: memref<10xf32, #tpu.memory_space<smem>>, %arg3: memref<10xf32, #tpu.memory_space<smem>>, %arg4: memref<1xf32, #tpu.memory_space<smem>>, %arg5: memref<2x8x512xf32, #tpu.memory_space<vmem>>, %arg6: memref<8x512xf32, #tpu.memory_space<vmem>>) attributes {dimension_semantics = [#tpu.dimension_semantics<parallel>], iteration_bounds = array<i64: 1>, scalar_prefetch = 0 : i64, scratch_operands = 0 : i64, tpu.core_type = #tpu.core_type<tc>, window_params = [{transform_indices = @transform_0, window_bounds = array<i64: 20>}, {transform_indices = @transform_1, window_bounds = array<i64: 10>}, {transform_indices = @transform_2, window_bounds = array<i64: 10>}, {transform_indices = @transform_3, window_bounds = array<i64: 1>}, {transform_indices = @transform_4, window_bounds = array<i64: 2, 8, 512>}, {transform_indices = @transform_5, window_bounds = array<i64: 8, 512>}]} {
    %c0 = arith.constant 0 : index
    %c0_0 = arith.constant 0 : index
    %c0_1 = arith.constant 0 : index
    %0 = vector.load %arg5[%c0, %c0_0, %c0_1] : memref<2x8x512xf32, #tpu.memory_space<vmem>>, vector<1x8x512xf32>
    %1 = vector.shape_cast %0 : vector<1x8x512xf32> to vector<8x512xf32>
    %c1 = arith.constant 1 : index
    %c0_2 = arith.constant 0 : index
    %c0_3 = arith.constant 0 : index
    %2 = vector.load %arg5[%c1, %c0_2, %c0_3] : memref<2x8x512xf32, #tpu.memory_space<vmem>>, vector<1x8x512xf32>
    %3 = vector.shape_cast %2 : vector<1x8x512xf32> to vector<8x512xf32>
    %c0_4 = arith.constant 0 : index
    %4 = memref.load %arg1[%c0_4] : memref<20xf32, #tpu.memory_space<smem>>
    %5 = vector.broadcast %4 : f32 to vector<8x512xf32>
    %6 = arith.mulf %5, %1 : vector<8x512xf32>
    %c10 = arith.constant 10 : index
    %7 = memref.load %arg1[%c10] : memref<20xf32, #tpu.memory_space<smem>>
    %8 = vector.broadcast %7 : f32 to vector<8x512xf32>
    %9 = arith.mulf %8, %3 : vector<8x512xf32>
    %10 = arith.addf %6, %9 : vector<8x512xf32>
    %c0_5 = arith.constant 0 : index
    %11 = memref.load %arg2[%c0_5] : memref<10xf32, #tpu.memory_space<smem>>
    %12 = vector.broadcast %11 : f32 to vector<8x512xf32>
    %13 = arith.addf %10, %12 : vector<8x512xf32>
    %cst = arith.constant 0.000000e+00 : f32
    %14 = vector.broadcast %cst : f32 to vector<8x512xf32>
    %15 = arith.maximumf %13, %14 : vector<8x512xf32>
    %c0_6 = arith.constant 0 : index
    %16 = memref.load %arg3[%c0_6] : memref<10xf32, #tpu.memory_space<smem>>
    %17 = vector.broadcast %16 : f32 to vector<8x512xf32>
    %18 = arith.mulf %17, %15 : vector<8x512xf32>
    %c0_7 = arith.constant 0 : index
    %19 = memref.load %arg4[%c0_7] : memref<1xf32, #tpu.memory_space<smem>>
    %20 = vector.broadcast %19 : f32 to vector<8x512xf32>
    %21 = arith.addf %18, %20 : vector<8x512xf32>
    %c1_8 = arith.constant 1 : index
    %22 = memref.load %arg1[%c1_8] : memref<20xf32, #tpu.memory_space<smem>>
    %23 = vector.broadcast %22 : f32 to vector<8x512xf32>
    %24 = arith.mulf %23, %1 : vector<8x512xf32>
    %c11 = arith.constant 11 : index
    %25 = memref.load %arg1[%c11] : memref<20xf32, #tpu.memory_space<smem>>
    %26 = vector.broadcast %25 : f32 to vector<8x512xf32>
    %27 = arith.mulf %26, %3 : vector<8x512xf32>
    %28 = arith.addf %24, %27 : vector<8x512xf32>
    %c1_9 = arith.constant 1 : index
    %29 = memref.load %arg2[%c1_9] : memref<10xf32, #tpu.memory_space<smem>>
    %30 = vector.broadcast %29 : f32 to vector<8x512xf32>
    %31 = arith.addf %28, %30 : vector<8x512xf32>
    %cst_10 = arith.constant 0.000000e+00 : f32
    %32 = vector.broadcast %cst_10 : f32 to vector<8x512xf32>
    %33 = arith.maximumf %31, %32 : vector<8x512xf32>
    %c1_11 = arith.constant 1 : index
    %34 = memref.load %arg3[%c1_11] : memref<10xf32, #tpu.memory_space<smem>>
    %35 = vector.broadcast %34 : f32 to vector<8x512xf32>
    %36 = arith.mulf %35, %33 : vector<8x512xf32>
    %c2 = arith.constant 2 : index
    %37 = memref.load %arg1[%c2] : memref<20xf32, #tpu.memory_space<smem>>
    %38 = vector.broadcast %37 : f32 to vector<8x512xf32>
    %39 = arith.mulf %38, %1 : vector<8x512xf32>
    %c12 = arith.constant 12 : index
    %40 = memref.load %arg1[%c12] : memref<20xf32, #tpu.memory_space<smem>>
    %41 = vector.broadcast %40 : f32 to vector<8x512xf32>
    %42 = arith.mulf %41, %3 : vector<8x512xf32>
    %43 = arith.addf %39, %42 : vector<8x512xf32>
    %c2_12 = arith.constant 2 : index
    %44 = memref.load %arg2[%c2_12] : memref<10xf32, #tpu.memory_space<smem>>
    %45 = vector.broadcast %44 : f32 to vector<8x512xf32>
    %46 = arith.addf %43, %45 : vector<8x512xf32>
    %cst_13 = arith.constant 0.000000e+00 : f32
    %47 = vector.broadcast %cst_13 : f32 to vector<8x512xf32>
    %48 = arith.maximumf %46, %47 : vector<8x512xf32>
    %c2_14 = arith.constant 2 : index
    %49 = memref.load %arg3[%c2_14] : memref<10xf32, #tpu.memory_space<smem>>
    %50 = vector.broadcast %49 : f32 to vector<8x512xf32>
    %51 = arith.mulf %50, %48 : vector<8x512xf32>
    %c3 = arith.constant 3 : index
    %52 = memref.load %arg1[%c3] : memref<20xf32, #tpu.memory_space<smem>>
    %53 = vector.broadcast %52 : f32 to vector<8x512xf32>
    %54 = arith.mulf %53, %1 : vector<8x512xf32>
    %c13 = arith.constant 13 : index
    %55 = memref.load %arg1[%c13] : memref<20xf32, #tpu.memory_space<smem>>
    %56 = vector.broadcast %55 : f32 to vector<8x512xf32>
    %57 = arith.mulf %56, %3 : vector<8x512xf32>
    %58 = arith.addf %54, %57 : vector<8x512xf32>
    %c3_15 = arith.constant 3 : index
    %59 = memref.load %arg2[%c3_15] : memref<10xf32, #tpu.memory_space<smem>>
    %60 = vector.broadcast %59 : f32 to vector<8x512xf32>
    %61 = arith.addf %58, %60 : vector<8x512xf32>
    %cst_16 = arith.constant 0.000000e+00 : f32
    %62 = vector.broadcast %cst_16 : f32 to vector<8x512xf32>
    %63 = arith.maximumf %61, %62 : vector<8x512xf32>
    %c3_17 = arith.constant 3 : index
    %64 = memref.load %arg3[%c3_17] : memref<10xf32, #tpu.memory_space<smem>>
    %65 = vector.broadcast %64 : f32 to vector<8x512xf32>
    %66 = arith.mulf %65, %63 : vector<8x512xf32>
    %c4 = arith.constant 4 : index
    %67 = memref.load %arg1[%c4] : memref<20xf32, #tpu.memory_space<smem>>
    %68 = vector.broadcast %67 : f32 to vector<8x512xf32>
    %69 = arith.mulf %68, %1 : vector<8x512xf32>
    %c14 = arith.constant 14 : index
    %70 = memref.load %arg1[%c14] : memref<20xf32, #tpu.memory_space<smem>>
    %71 = vector.broadcast %70 : f32 to vector<8x512xf32>
    %72 = arith.mulf %71, %3 : vector<8x512xf32>
    %73 = arith.addf %69, %72 : vector<8x512xf32>
    %c4_18 = arith.constant 4 : index
    %74 = memref.load %arg2[%c4_18] : memref<10xf32, #tpu.memory_space<smem>>
    %75 = vector.broadcast %74 : f32 to vector<8x512xf32>
    %76 = arith.addf %73, %75 : vector<8x512xf32>
    %cst_19 = arith.constant 0.000000e+00 : f32
    %77 = vector.broadcast %cst_19 : f32 to vector<8x512xf32>
    %78 = arith.maximumf %76, %77 : vector<8x512xf32>
    %c4_20 = arith.constant 4 : index
    %79 = memref.load %arg3[%c4_20] : memref<10xf32, #tpu.memory_space<smem>>
    %80 = vector.broadcast %79 : f32 to vector<8x512xf32>
    %81 = arith.mulf %80, %78 : vector<8x512xf32>
    %82 = arith.addf %21, %81 : vector<8x512xf32>
    %c5 = arith.constant 5 : index
    %83 = memref.load %arg1[%c5] : memref<20xf32, #tpu.memory_space<smem>>
    %84 = vector.broadcast %83 : f32 to vector<8x512xf32>
    %85 = arith.mulf %84, %1 : vector<8x512xf32>
    %c15 = arith.constant 15 : index
    %86 = memref.load %arg1[%c15] : memref<20xf32, #tpu.memory_space<smem>>
    %87 = vector.broadcast %86 : f32 to vector<8x512xf32>
    %88 = arith.mulf %87, %3 : vector<8x512xf32>
    %89 = arith.addf %85, %88 : vector<8x512xf32>
    %c5_21 = arith.constant 5 : index
    %90 = memref.load %arg2[%c5_21] : memref<10xf32, #tpu.memory_space<smem>>
    %91 = vector.broadcast %90 : f32 to vector<8x512xf32>
    %92 = arith.addf %89, %91 : vector<8x512xf32>
    %cst_22 = arith.constant 0.000000e+00 : f32
    %93 = vector.broadcast %cst_22 : f32 to vector<8x512xf32>
    %94 = arith.maximumf %92, %93 : vector<8x512xf32>
    %c5_23 = arith.constant 5 : index
    %95 = memref.load %arg3[%c5_23] : memref<10xf32, #tpu.memory_space<smem>>
    %96 = vector.broadcast %95 : f32 to vector<8x512xf32>
    %97 = arith.mulf %96, %94 : vector<8x512xf32>
    %98 = arith.addf %36, %97 : vector<8x512xf32>
    %c6 = arith.constant 6 : index
    %99 = memref.load %arg1[%c6] : memref<20xf32, #tpu.memory_space<smem>>
    %100 = vector.broadcast %99 : f32 to vector<8x512xf32>
    %101 = arith.mulf %100, %1 : vector<8x512xf32>
    %c16 = arith.constant 16 : index
    %102 = memref.load %arg1[%c16] : memref<20xf32, #tpu.memory_space<smem>>
    %103 = vector.broadcast %102 : f32 to vector<8x512xf32>
    %104 = arith.mulf %103, %3 : vector<8x512xf32>
    %105 = arith.addf %101, %104 : vector<8x512xf32>
    %c6_24 = arith.constant 6 : index
    %106 = memref.load %arg2[%c6_24] : memref<10xf32, #tpu.memory_space<smem>>
    %107 = vector.broadcast %106 : f32 to vector<8x512xf32>
    %108 = arith.addf %105, %107 : vector<8x512xf32>
    %cst_25 = arith.constant 0.000000e+00 : f32
    %109 = vector.broadcast %cst_25 : f32 to vector<8x512xf32>
    %110 = arith.maximumf %108, %109 : vector<8x512xf32>
    %c6_26 = arith.constant 6 : index
    %111 = memref.load %arg3[%c6_26] : memref<10xf32, #tpu.memory_space<smem>>
    %112 = vector.broadcast %111 : f32 to vector<8x512xf32>
    %113 = arith.mulf %112, %110 : vector<8x512xf32>
    %114 = arith.addf %51, %113 : vector<8x512xf32>
    %c7 = arith.constant 7 : index
    %115 = memref.load %arg1[%c7] : memref<20xf32, #tpu.memory_space<smem>>
    %116 = vector.broadcast %115 : f32 to vector<8x512xf32>
    %117 = arith.mulf %116, %1 : vector<8x512xf32>
    %c17 = arith.constant 17 : index
    %118 = memref.load %arg1[%c17] : memref<20xf32, #tpu.memory_space<smem>>
    %119 = vector.broadcast %118 : f32 to vector<8x512xf32>
    %120 = arith.mulf %119, %3 : vector<8x512xf32>
    %121 = arith.addf %117, %120 : vector<8x512xf32>
    %c7_27 = arith.constant 7 : index
    %122 = memref.load %arg2[%c7_27] : memref<10xf32, #tpu.memory_space<smem>>
    %123 = vector.broadcast %122 : f32 to vector<8x512xf32>
    %124 = arith.addf %121, %123 : vector<8x512xf32>
    %cst_28 = arith.constant 0.000000e+00 : f32
    %125 = vector.broadcast %cst_28 : f32 to vector<8x512xf32>
    %126 = arith.maximumf %124, %125 : vector<8x512xf32>
    %c7_29 = arith.constant 7 : index
    %127 = memref.load %arg3[%c7_29] : memref<10xf32, #tpu.memory_space<smem>>
    %128 = vector.broadcast %127 : f32 to vector<8x512xf32>
    %129 = arith.mulf %128, %126 : vector<8x512xf32>
    %130 = arith.addf %66, %129 : vector<8x512xf32>
    %c8 = arith.constant 8 : index
    %131 = memref.load %arg1[%c8] : memref<20xf32, #tpu.memory_space<smem>>
    %132 = vector.broadcast %131 : f32 to vector<8x512xf32>
    %133 = arith.mulf %132, %1 : vector<8x512xf32>
    %c18 = arith.constant 18 : index
    %134 = memref.load %arg1[%c18] : memref<20xf32, #tpu.memory_space<smem>>
    %135 = vector.broadcast %134 : f32 to vector<8x512xf32>
    %136 = arith.mulf %135, %3 : vector<8x512xf32>
    %137 = arith.addf %133, %136 : vector<8x512xf32>
    %c8_30 = arith.constant 8 : index
    %138 = memref.load %arg2[%c8_30] : memref<10xf32, #tpu.memory_space<smem>>
    %139 = vector.broadcast %138 : f32 to vector<8x512xf32>
    %140 = arith.addf %137, %139 : vector<8x512xf32>
    %cst_31 = arith.constant 0.000000e+00 : f32
    %141 = vector.broadcast %cst_31 : f32 to vector<8x512xf32>
    %142 = arith.maximumf %140, %141 : vector<8x512xf32>
    %c8_32 = arith.constant 8 : index
    %143 = memref.load %arg3[%c8_32] : memref<10xf32, #tpu.memory_space<smem>>
    %144 = vector.broadcast %143 : f32 to vector<8x512xf32>
    %145 = arith.mulf %144, %142 : vector<8x512xf32>
    %146 = arith.addf %82, %145 : vector<8x512xf32>
    %c9 = arith.constant 9 : index
    %147 = memref.load %arg1[%c9] : memref<20xf32, #tpu.memory_space<smem>>
    %148 = vector.broadcast %147 : f32 to vector<8x512xf32>
    %149 = arith.mulf %148, %1 : vector<8x512xf32>
    %c19 = arith.constant 19 : index
    %150 = memref.load %arg1[%c19] : memref<20xf32, #tpu.memory_space<smem>>
    %151 = vector.broadcast %150 : f32 to vector<8x512xf32>
    %152 = arith.mulf %151, %3 : vector<8x512xf32>
    %153 = arith.addf %149, %152 : vector<8x512xf32>
    %c9_33 = arith.constant 9 : index
    %154 = memref.load %arg2[%c9_33] : memref<10xf32, #tpu.memory_space<smem>>
    %155 = vector.broadcast %154 : f32 to vector<8x512xf32>
    %156 = arith.addf %153, %155 : vector<8x512xf32>
    %cst_34 = arith.constant 0.000000e+00 : f32
    %157 = vector.broadcast %cst_34 : f32 to vector<8x512xf32>
    %158 = arith.maximumf %156, %157 : vector<8x512xf32>
    %c9_35 = arith.constant 9 : index
    %159 = memref.load %arg3[%c9_35] : memref<10xf32, #tpu.memory_space<smem>>
    %160 = vector.broadcast %159 : f32 to vector<8x512xf32>
    %161 = arith.mulf %160, %158 : vector<8x512xf32>
    %162 = arith.addf %98, %161 : vector<8x512xf32>
    %163 = arith.addf %146, %162 : vector<8x512xf32>
    %164 = arith.addf %114, %130 : vector<8x512xf32>
    %165 = arith.addf %163, %164 : vector<8x512xf32>
    %166 = arith.negf %165 : vector<8x512xf32>
    %167 = math.exp %166 : vector<8x512xf32>
    %cst_36 = arith.constant 1.000000e+00 : f32
    %168 = vector.broadcast %cst_36 : f32 to vector<8x512xf32>
    %169 = arith.addf %168, %167 : vector<8x512xf32>
    %170 = arith.divf %168, %169 : vector<8x512xf32>
    %c0_37 = arith.constant 0 : index
    %c0_38 = arith.constant 0 : index
    %171 = vector.load %arg6[%c0_37, %c0_38] : memref<8x512xf32, #tpu.memory_space<vmem>>, vector<8x512xf32>
    tpu.vector_store %arg6[%c0_37, %c0_38], %170 {strides = array<i32>} : memref<8x512xf32, #tpu.memory_space<vmem>>, vector<8x512xf32>,
    return
  }
  func.func @transform_0(%arg0: i32) -> i32 {
    %c0_i32 = arith.constant 0 : i32
    %c0_i32_0 = arith.constant 0 : i32
    return %c0_i32 : i32
  }
  func.func @transform_1(%arg0: i32) -> i32 {
    %c0_i32 = arith.constant 0 : i32
    %c0_i32_0 = arith.constant 0 : i32
    return %c0_i32 : i32
  }
  func.func @transform_2(%arg0: i32) -> i32 {
    %c0_i32 = arith.constant 0 : i32
    %c0_i32_0 = arith.constant 0 : i32
    return %c0_i32 : i32
  }
  func.func @transform_3(%arg0: i32) -> i32 {
    %c0_i32 = arith.constant 0 : i32
    %c0_i32_0 = arith.constant 0 : i32
    return %c0_i32 : i32
  }
  func.func @transform_4(%arg0: i32) -> (i32, i32, i32) {
    %c0_i32 = arith.constant 0 : i32
    %c0_i32_0 = arith.constant 0 : i32
    %c0_i32_1 = arith.constant 0 : i32
    return %c0_i32, %arg0, %c0_i32_0 : i32, i32, i32
  }
  func.func @transform_5(%arg0: i32) -> (i32, i32) {
    %c0_i32 = arith.constant 0 : i32
    %c0_i32_0 = arith.constant 0 : i32
    return %arg0, %c0_i32 : i32, i32
  }
}

</mosaic_0001>

<bundles_post_ra>
// kernel: rede_neural1_forward.1
= control target key start
LH: loop header
LB: loop body
LE: loop exit
PB: predicated region body
PF: predicated region fallthrough
CT: control target
= control target key end

     0   :  { %11 = vsyncpa [#allocation4], 0  ;;  %s941_s0 = inlined_call_operand.vmem [shape: f32[20], index: 0, kind: input, shape index: {}]   ;;  %s942_s1 = inlined_call_operand.vmem [shape: f32[10], index: 1, kind: input, shape index: {}]   ;;  %s943_s2 = inlined_call_operand.vmem [shape: f32[10], index: 2, kind: input, shape index: {}]   ;;  %s944_s3 = inlined_call_operand.<no memory space> [shape: f32[1], index: 3, kind: input, shape index: {}]   ;;  %s945_s4 = inlined_call_operand.vmem [shape: f32[2,8,512], index: 4, kind: input, shape index: {}]   ;;  %s946_s5 = inlined_call_operand.vmem [shape: f32[8,512], index: 5, kind: output, shape index: {}]  }
   0x1   :  { %12 = vsyncpa [#allocation6], 0  ;;  %s29_s20 = sshll.u32 %s942_s1, 4  ;;  %s19_s23 = sshll.u32 %s941_s0, 4  ;;  %s30_s20 = int_to_ptr.vmem [resolvable:$true] %s29_s20  ;;  %s20_s23 = int_to_ptr.vmem [resolvable:$true] %s19_s23 }
   0x2   :  { %s526_s24 = scalar_lea.vmem %s30_s20, 16  ;;  %p531_p1 = scmp.lt.s32.totalorder %s30_s20, %s30_s20 }
   0x3   :  { %p527_p0 = scmp.ne.s32.totalorder %s30_s20, %s526_s24  ;;  %p532_p2 = scmp.lt.s32.totalorder %s526_s24, %s526_s24 }
   0x5   :  { %p533_p3 = por %p532_p2, %p531_p1 }
   0x7   :  { %p534_p4 = pnand %p533_p3, %p527_p0 }
   0x9   :  { %537 = shalt.err (!%p534_p4)
}
   0xa   :  { %s566_s25 = smov [#allocation5]   ;;  %s538_s26 = scalar_lea.vmem %s20_s23, 16 }
   0xb   :  { %32 = dma.vmem_to_smem %s30_s20, 16, %s566_s25, [#allocation6]  }
   0xc   :  { %p539_p5 = scmp.ne.s32.totalorder %s20_s23, %s538_s26  ;;  %p543_p6 = scmp.lt.s32.totalorder %s20_s23, %s20_s23 }
   0xd   :  { %p544_p7 = scmp.lt.s32.totalorder %s538_s26, %s538_s26 }
   0xf   :  { %p545_p8 = por %p544_p7, %p543_p6 }
  0x11   :  { %p546_p9 = pnand %p545_p8, %p539_p5 }
  0x13   :  { %549 = shalt.err (!%p546_p9)
}
  0x14   :  { %s567_s1 = smov [#allocation3]   ;;  %s39_s28 = sshll.u32 %s943_s2, 4  ;;  %s40_s28 = int_to_ptr.vmem [resolvable:$true] %s39_s28 }
  0x15   :  { %22 = dma.vmem_to_smem %s20_s23, 16, %s567_s1, [#allocation4]  }
  0x16   :  { %s550_s29 = scalar_lea.vmem %s40_s28, 16  ;;  %p555_p11 = scmp.lt.s32.totalorder %s40_s28, %s40_s28 }
  0x17   :  { %p551_p10 = scmp.ne.s32.totalorder %s40_s28, %s550_s29  ;;  %p556_p12 = scmp.lt.s32.totalorder %s550_s29, %s550_s29 }
  0x19   :  { %p557_p13 = por %p556_p12, %p555_p11 }
  0x1b   :  { %p558_p0 = pnand %p557_p13, %p551_p10 }
  0x1d   :  { %561 = shalt.err (!%p558_p0)
}
  0x1e   :  { %s568_s30 = smov [#allocation7]  }
  0x1f   :  { %42 = dma.vmem_to_smem %s40_s28, 16, %s568_s30, [#allocation6]  }
  0x20   :  { %562 = dma.done.wait [#allocation4], 16  }
  0x21   :  { %563 = vsyncadd [#allocation4], 4294967280 }
  0x22   :  { %564 = dma.done.wait [#allocation6], 32  }
  0x23   :  { %565 = vsyncadd [#allocation6], 4294967264 }
  0x24   :  { %56 = sfence }
  0x25   :  { %s66_s6 = sld [smem:[#allocation3]]  ;;  %v611_v0 = vld [vmem:[%s945_s4] sm:$0xff]  ;;  %v616_v1 = vld [vmem:[%s945_s4 + $0x8] sm:$0xff]  ;;  %v621_v2 = vld [vmem:[%s945_s4 + $0x10] sm:$0xff]  ;;  %v99_v25 = vstv %s944_s3 }
  0x26   :  { %s466_s7 = sld [smem:[#allocation3 + $0xa]]  ;;  %v626_v3 = vld [vmem:[%s945_s4 + $0x18] sm:$0xff]  ;;  %v631_v4 = vld [vmem:[%s945_s4 + $0x20] sm:$0xff]  ;;  %v638_v5 = vld [vmem:[%s945_s4 + $0x28] sm:$0xff] }
  0x27   :  { %s82_s8 = sld [smem:[#allocation5]]  ;;  %v643_v6 = vld [vmem:[%s945_s4 + $0x30] sm:$0xff]  ;;  %v648_v7 = vld [vmem:[%s945_s4 + $0x38] sm:$0xff] }
  0x28   :  { %s92_s10 = sld [smem:[#allocation7]] }
  0x29   :  { %s467_s17 = sld [smem:[#allocation3 + $0x1]] }
  0x2a   :  { %s633_s20 = sld [smem:[#allocation3 + $0xb]] }
  0x2b   :  { %v67_v8 = vstv %s66_s6  ;;  %s469_s1 = sld [smem:[#allocation5 + $0x1]] }
  0x2c   :  { %v68_v9 = vmul.f32 %v67_v8, %v611_v0  ;;  %v69_v10 = vmul.f32 %v67_v8, %v616_v1  ;;  %v70_v11 = vmul.f32 %v67_v8, %v621_v2  ;;  %v71_v12 = vmul.f32 %v67_v8, %v626_v3  ;;  %s658_s4 = sld [smem:[#allocation3 + $0x2]] }
  0x2d   :  { %v73_v13 = vstv %s466_s7  ;;  %v83_v18 = vstv %s82_s8  ;;  %s665_s28 = sld [smem:[#allocation7 + $0x1]] }
  0x2e   :  { %v74_v14 = vmul.f32 %v631_v4, %v73_v13  ;;  %v75_v15 = vmul.f32 %v638_v5, %v73_v13  ;;  %v76_v16 = vmul.f32 %v643_v6, %v73_v13  ;;  %v77_v17 = vmul.f32 %v648_v7, %v73_v13  ;;  %s670_s29 = sld [smem:[#allocation3 + $0xc]] }
  0x2f   :  { %v105_v19 = vstv %s467_s17  ;;  %v93_v24 = vstv %s92_s10  ;;  %s672_s3 = sld [smem:[#allocation3 + $0x3]] }
  0x30   :  { %v78_v20 = vadd.f32 %v74_v14, %v68_v9  ;;  %v79_v21 = vadd.f32 %v75_v15, %v69_v10  ;;  %v80_v22 = vadd.f32 %v76_v16, %v70_v11  ;;  %v81_v23 = vadd.f32 %v77_v17, %v71_v12  ;;  %s678_s30 = sld [smem:[#allocation5 + $0x2]] }
  0x31   :  { %v106_v26 = vmul.f32 %v105_v19, %v611_v0  ;;  %v107_v27 = vmul.f32 %v105_v19, %v616_v1  ;;  %v108_v32 = vmul.f32 %v105_v19, %v621_v2  ;;  %v109_v33 = vmul.f32 %v105_v19, %v626_v3  ;;  %s474_s6 = sld [smem:[#allocation7 + $0x2]] }
  0x32   :  { %v84_v28 = vadd.f32 %v83_v18, %v78_v20  ;;  %v85_v29 = vadd.f32 %v83_v18, %v79_v21  ;;  %v86_v30 = vadd.f32 %v83_v18, %v80_v22  ;;  %v87_v31 = vadd.f32 %v83_v18, %v81_v23  ;;  %s681_s7 = sld [smem:[#allocation3 + $0xd]] }
  0x33   :  { %v111_v34 = vstv %s633_s20  ;;  %v121_v35 = vstv %s469_s1  ;;  %v137_v52 = vstv %s658_s4  ;;  %s683_s8 = sld [smem:[#allocation5 + $0x3]]  ;;  %v131_v60 = vstv %s665_s28 }
  0x34   :  { %v88_v36 = vmax.f32 %v84_v28, 0.0  ;;  %v89_v37 = vmax.f32 %v85_v29, 0.0  ;;  %v90_v38 = vmax.f32 %v86_v30, 0.0  ;;  %v91_v39 = vmax.f32 %v87_v31, 0.0  ;;  %s705_s9 = sld [smem:[#allocation3 + $0x4]] }
  0x35   :  { %v112_v40 = vmul.f32 %v631_v4, %v111_v34  ;;  %v113_v41 = vmul.f32 %v638_v5, %v111_v34  ;;  %v114_v42 = vmul.f32 %v643_v6, %v111_v34  ;;  %v115_v43 = vmul.f32 %v648_v7, %v111_v34  ;;  %s711_s2 = sld [smem:[#allocation7 + $0x3]] }
  0x36   :  { %v94_v44 = vmul.f32 %v93_v24, %v88_v36  ;;  %v95_v45 = vmul.f32 %v93_v24, %v89_v37  ;;  %v96_v46 = vmul.f32 %v93_v24, %v90_v38  ;;  %v97_v47 = vmul.f32 %v93_v24, %v91_v39  ;;  %s717_s10 = sld [smem:[#allocation3 + $0xe]] }
  0x37   :  { %v116_v48 = vadd.f32 %v112_v40, %v106_v26  ;;  %v117_v49 = vadd.f32 %v113_v41, %v107_v27  ;;  %v118_v50 = vadd.f32 %v114_v42, %v108_v32  ;;  %v119_v51 = vadd.f32 %v115_v43, %v109_v33  ;;  %s719_s11 = sld [smem:[#allocation3 + $0x5]] }
  0x38   :  { %v685_v57 = vadd.f32 %v99_v25, %v94_v44  ;;  %v687_v58 = vadd.f32 %v99_v25, %v95_v45  ;;  %v689_v59 = vadd.f32 %v99_v25, %v96_v46  ;;  %v692_v61 = vadd.f32 %v99_v25, %v97_v47  ;;  %s725_s12 = sld [smem:[#allocation5 + $0x4]] }
  0x39   :  { %v122_v53 = vadd.f32 %v121_v35, %v116_v48  ;;  %v123_v54 = vadd.f32 %v121_v35, %v117_v49  ;;  %v124_v55 = vadd.f32 %v121_v35, %v118_v50  ;;  %v125_v56 = vadd.f32 %v121_v35, %v119_v51  ;;  %s727_s13 = sld [smem:[#allocation7 + $0x4]] }
  0x3a   :  { %v138_v63 = vmul.f32 %v137_v52, %v611_v0  ;;  %v139_v8 = vmul.f32 %v137_v52, %v616_v1  ;;  %v140_v9 = vmul.f32 %v137_v52, %v621_v2  ;;  %v141_v10 = vmul.f32 %v137_v52, %v626_v3  ;;  %s736_s14 = sld [smem:[#allocation3 + $0xf]] }
  0x3b   :  { %v126_v62 = vmax.f32 %v122_v53, 0.0  ;;  %v143_v11 = vstv %s670_s29  ;;  %v169_v12 = vstv %s672_s3  ;;  %v127_v13 = vmax.f32 %v123_v54, 0.0  ;;  %s744_s15 = sld [smem:[#allocation5 + $0x5]] }
  0x3c   :  { %v128_v14 = vmax.f32 %v124_v55, 0.0  ;;  %v129_v15 = vmax.f32 %v125_v56, 0.0  ;;  %v153_v16 = vstv %s678_s30  ;;  %v144_v17 = vmul.f32 %v631_v4, %v143_v11  ;;  %s777_s16 = sld [smem:[#allocation7 + $0x5]] }
  0x3d   :  { %v145_v18 = vmul.f32 %v638_v5, %v143_v11  ;;  %v146_v19 = vmul.f32 %v643_v6, %v143_v11  ;;  %v147_v20 = vmul.f32 %v648_v7, %v143_v11  ;;  %v707_v21 = vmul.f32 %v131_v60, %v126_v62  ;;  %s779_s17 = sld [smem:[#allocation3 + $0x6]] }
  0x3e   :  { %v163_v22 = vstv %s474_s6  ;;  %v170_v23 = vmul.f32 %v169_v12, %v611_v0  ;;  %v171_v24 = vmul.f32 %v169_v12, %v616_v1  ;;  %v148_v25 = vadd.f32 %v144_v17, %v138_v63  ;;  %s789_s18 = sld [smem:[#allocation3 + $0x10]] }
  0x3f   :  { %v149_v26 = vadd.f32 %v145_v18, %v139_v8  ;;  %v150_v27 = vadd.f32 %v146_v19, %v140_v9  ;;  %v151_v28 = vadd.f32 %v147_v20, %v141_v10  ;;  %v172_v29 = vmul.f32 %v169_v12, %v621_v2  ;;  %s791_s19 = sld [smem:[#allocation3 + $0x7]] }
  0x40   :  { %v173_v30 = vmul.f32 %v169_v12, %v626_v3  ;;  %v175_v31 = vstv %s681_s7  ;;  %v185_v32 = vstv %s683_s8  ;;  %v154_v33 = vadd.f32 %v153_v16, %v148_v25  ;;  %s793_s20 = sld [smem:[#allocation5 + $0x6]] }
  0x41   :  { %v155_v34 = vadd.f32 %v153_v16, %v149_v26  ;;  %v156_v35 = vadd.f32 %v153_v16, %v150_v27  ;;  %v157_v36 = vadd.f32 %v153_v16, %v151_v28  ;;  %v176_v37 = vmul.f32 %v631_v4, %v175_v31  ;;  %s795_s21 = sld [smem:[#allocation7 + $0x6]] }
  0x42   :  { %v177_v38 = vmul.f32 %v638_v5, %v175_v31  ;;  %v178_v39 = vmul.f32 %v643_v6, %v175_v31  ;;  %v179_v40 = vmul.f32 %v648_v7, %v175_v31  ;;  %v158_v41 = vmax.f32 %v154_v33, 0.0  ;;  %s805_s22 = sld [smem:[#allocation3 + $0x11]] }
  0x43   :  { %v159_v42 = vmax.f32 %v155_v34, 0.0  ;;  %v160_v43 = vmax.f32 %v156_v35, 0.0  ;;  %v161_v44 = vmax.f32 %v157_v36, 0.0  ;;  %v180_v45 = vadd.f32 %v176_v37, %v170_v23  ;;  %s807_s23 = sld [smem:[#allocation5 + $0x7]] }
  0x44   :  { %v181_v46 = vadd.f32 %v177_v38, %v171_v24  ;;  %v182_v47 = vadd.f32 %v178_v39, %v172_v29  ;;  %v183_v48 = vadd.f32 %v179_v40, %v173_v30  ;;  %v729_v49 = vmul.f32 %v131_v60, %v127_v13  ;;  %s841_s24 = sld [smem:[#allocation7 + $0x7]] }
  0x45   :  { %v731_v50 = vmul.f32 %v131_v60, %v128_v14  ;;  %v733_v51 = vmul.f32 %v131_v60, %v129_v15  ;;  %v201_v52 = vstv %s705_s9  ;;  %v186_v53 = vadd.f32 %v185_v32, %v180_v45  ;;  %s843_s25 = sld [smem:[#allocation3 + $0x8]] }
  0x46   :  { %v738_v54 = vadd.f32 %v185_v32, %v181_v46  ;;  %v740_v55 = vadd.f32 %v185_v32, %v182_v47  ;;  %v742_v56 = vadd.f32 %v185_v32, %v183_v48  ;;  %v746_v62 = vmul.f32 %v163_v22, %v158_v41  ;;  %s853_s26 = sld [smem:[#allocation3 + $0x12]] }
  0x47   :  { %v748_v63 = vmul.f32 %v163_v22, %v159_v42  ;;  %v750_v60 = vmul.f32 %v163_v22, %v160_v43  ;;  %v753_v8 = vstv %s711_s2  ;;  %v755_v9 = vmul.f32 %v163_v22, %v161_v44  ;;  %s855_s1 = sld [smem:[#allocation3 + $0x9]] }
  0x48   :  { %v190_v10 = vmax.f32 %v186_v53, 0.0  ;;  %v202_v11 = vmul.f32 %v201_v52, %v611_v0  ;;  %v203_v12 = vmul.f32 %v201_v52, %v616_v1  ;;  %v204_v13 = vmul.f32 %v201_v52, %v621_v2  ;;  %s857_s4 = sld [smem:[#allocation5 + $0x8]] }
  0x49   :  { %v205_v14 = vmul.f32 %v201_v52, %v626_v3  ;;  %v207_v15 = vstv %s717_s10  ;;  %v237_v16 = vstv %s719_s11  ;;  %v191_v17 = vmax.f32 %v738_v54, 0.0  ;;  %s859_s0 = sld [smem:[#allocation7 + $0x8]] }
  0x4a   :  { %v192_v18 = vmax.f32 %v740_v55, 0.0  ;;  %v193_v19 = vmax.f32 %v742_v56, 0.0  ;;  %v217_v20 = vstv %s725_s12  ;;  %v208_v22 = vmul.f32 %v631_v4, %v207_v15  ;;  %s869_s27 = sld [smem:[#allocation3 + $0x13]] }
  0x4b   :  { %v209_v23 = vmul.f32 %v638_v5, %v207_v15  ;;  %v210_v24 = vmul.f32 %v643_v6, %v207_v15  ;;  %v211_v25 = vmul.f32 %v648_v7, %v207_v15  ;;  %v772_v26 = vmul.f32 %v753_v8, %v190_v10  ;;  %s871_s28 = sld [smem:[#allocation5 + $0x9]] }
  0x4c   :  { %v227_v27 = vstv %s727_s13  ;;  %v238_v28 = vmul.f32 %v237_v16, %v611_v0  ;;  %v239_v29 = vmul.f32 %v237_v16, %v616_v1  ;;  %v212_v30 = vadd.f32 %v208_v22, %v202_v11  ;;  %s903_s29 = sld [smem:[#allocation7 + $0x9]] }
  0x4d   :  { %v213_v31 = vadd.f32 %v209_v23, %v203_v12  ;;  %v214_v32 = vadd.f32 %v210_v24, %v204_v13  ;;  %v215_v33 = vadd.f32 %v211_v25, %v205_v14  ;;  %v240_v34 = vmul.f32 %v237_v16, %v621_v2 }
  0x4e   :  { %v241_v35 = vmul.f32 %v237_v16, %v626_v3  ;;  %v243_v36 = vstv %s736_s14  ;;  %v253_v37 = vstv %s744_s15  ;;  %v218_v38 = vadd.f32 %v217_v20, %v212_v30 }
  0x4f   :  { %v219_v39 = vadd.f32 %v217_v20, %v213_v31  ;;  %v220_v40 = vadd.f32 %v217_v20, %v214_v32  ;;  %v221_v41 = vadd.f32 %v217_v20, %v215_v33  ;;  %v244_v42 = vmul.f32 %v631_v4, %v243_v36 }
  0x50   :  { %v245_v43 = vmul.f32 %v638_v5, %v243_v36  ;;  %v246_v44 = vmul.f32 %v643_v6, %v243_v36  ;;  %v247_v45 = vmul.f32 %v648_v7, %v243_v36  ;;  %v222_v46 = vmax.f32 %v218_v38, 0.0 }
  0x51   :  { %v223_v47 = vmax.f32 %v219_v39, 0.0  ;;  %v224_v48 = vmax.f32 %v220_v40, 0.0  ;;  %v225_v52 = vmax.f32 %v221_v41, 0.0  ;;  %v248_v53 = vadd.f32 %v244_v42, %v238_v28 }
  0x52   :  { %v249_v54 = vadd.f32 %v245_v43, %v239_v29  ;;  %v250_v55 = vadd.f32 %v246_v44, %v240_v34  ;;  %v251_v56 = vadd.f32 %v247_v45, %v241_v35  ;;  %v228_v10 = vmul.f32 %v227_v27, %v222_v46 }
  0x53   :  { %v229_v11 = vmul.f32 %v227_v27, %v223_v47  ;;  %v230_v12 = vmul.f32 %v227_v27, %v224_v48  ;;  %v231_v13 = vmul.f32 %v227_v27, %v225_v52  ;;  %v254_v14 = vadd.f32 %v253_v37, %v248_v53 }
  0x54   :  { %v255_v15 = vadd.f32 %v253_v37, %v249_v54  ;;  %v256_v16 = vadd.f32 %v253_v37, %v250_v55  ;;  %v257_v20 = vadd.f32 %v253_v37, %v251_v56  ;;  %v798_v22 = vmul.f32 %v753_v8, %v191_v17 }
  0x55   :  { %v801_v23 = vmul.f32 %v753_v8, %v192_v18  ;;  %v263_v24 = vstv %s777_s16  ;;  %v273_v25 = vstv %s779_s17  ;;  %v258_v28 = vmax.f32 %v254_v14, 0.0 }
  0x56   :  { %v259_v27 = vmax.f32 %v255_v15, 0.0  ;;  %v260_v29 = vmax.f32 %v256_v16, 0.0  ;;  %v261_v30 = vmax.f32 %v257_v20, 0.0  ;;  %v810_v31 = vmul.f32 %v753_v8, %v193_v19 }
  0x57   :  { %v813_v17 = vadd.f32 %v228_v10, %v685_v57  ;;  %v816_v18 = vadd.f32 %v229_v11, %v687_v58  ;;  %v819_v32 = vadd.f32 %v230_v12, %v689_v59  ;;  %v822_v33 = vadd.f32 %v231_v13, %v692_v61 }
  0x58   :  { %v264_v34 = vmul.f32 %v263_v24, %v258_v28  ;;  %v274_v35 = vmul.f32 %v273_v25, %v611_v0  ;;  %v275_v36 = vmul.f32 %v273_v25, %v616_v1  ;;  %v276_v8 = vmul.f32 %v273_v25, %v621_v2 }
  0x59   :  { %v277_v57 = vmul.f32 %v273_v25, %v626_v3  ;;  %v279_v19 = vstv %s789_s18  ;;  %v309_v37 = vstv %s791_s19  ;;  %v265_v58 = vmul.f32 %v263_v24, %v259_v27 }
  0x5a   :  { %v266_v38 = vmul.f32 %v263_v24, %v260_v29  ;;  %v267_v39 = vmul.f32 %v263_v24, %v261_v30  ;;  %v289_v59 = vstv %s793_s20  ;;  %v280_v40 = vmul.f32 %v631_v4, %v279_v19 }
  0x5b   :  { %v281_v61 = vmul.f32 %v638_v5, %v279_v19  ;;  %v282_v41 = vmul.f32 %v643_v6, %v279_v19  ;;  %v283_v42 = vmul.f32 %v648_v7, %v279_v19  ;;  %v836_v43 = vadd.f32 %v264_v34, %v707_v21 }
  0x5c   :  { %v299_v44 = vstv %s795_s21  ;;  %v310_v45 = vmul.f32 %v309_v37, %v611_v0  ;;  %v311_v46 = vmul.f32 %v309_v37, %v616_v1  ;;  %v284_v47 = vadd.f32 %v280_v40, %v274_v35 }
  0x5d   :  { %v285_v48 = vadd.f32 %v281_v61, %v275_v36  ;;  %v286_v52 = vadd.f32 %v282_v41, %v276_v8  ;;  %v287_v53 = vadd.f32 %v283_v42, %v277_v57  ;;  %v312_v54 = vmul.f32 %v309_v37, %v621_v2 }
  0x5e   :  { %v313_v55 = vmul.f32 %v309_v37, %v626_v3  ;;  %v315_v56 = vstv %s805_s22  ;;  %v325_v21 = vstv %s807_s23  ;;  %v290_v10 = vadd.f32 %v289_v59, %v284_v47 }
  0x5f   :  { %v291_v11 = vadd.f32 %v289_v59, %v285_v48  ;;  %v292_v12 = vadd.f32 %v289_v59, %v286_v52  ;;  %v293_v13 = vadd.f32 %v289_v59, %v287_v53  ;;  %v316_v14 = vmul.f32 %v631_v4, %v315_v56 }
  0x60   :  { %v317_v15 = vmul.f32 %v638_v5, %v315_v56  ;;  %v318_v16 = vmul.f32 %v643_v6, %v315_v56  ;;  %v319_v20 = vmul.f32 %v648_v7, %v315_v56  ;;  %v294_v24 = vmax.f32 %v290_v10, 0.0 }
  0x61   :  { %v295_v25 = vmax.f32 %v291_v11, 0.0  ;;  %v296_v28 = vmax.f32 %v292_v12, 0.0  ;;  %v297_v27 = vmax.f32 %v293_v13, 0.0  ;;  %v320_v29 = vadd.f32 %v316_v14, %v310_v45 }
  0x62   :  { %v321_v30 = vadd.f32 %v317_v15, %v311_v46  ;;  %v322_v34 = vadd.f32 %v318_v16, %v312_v54  ;;  %v323_v35 = vadd.f32 %v319_v20, %v313_v55  ;;  %v300_v36 = vmul.f32 %v299_v44, %v294_v24 }
  0x63   :  { %v301_v8 = vmul.f32 %v299_v44, %v295_v25  ;;  %v302_v57 = vmul.f32 %v299_v44, %v296_v28  ;;  %v303_v19 = vmul.f32 %v299_v44, %v297_v27  ;;  %v326_v37 = vadd.f32 %v325_v21, %v320_v29 }
  0x64   :  { %v327_v59 = vadd.f32 %v325_v21, %v321_v30  ;;  %v328_v40 = vadd.f32 %v325_v21, %v322_v34  ;;  %v329_v61 = vadd.f32 %v325_v21, %v323_v35  ;;  %v862_v41 = vadd.f32 %v265_v58, %v729_v49 }
  0x65   :  { %v865_v42 = vadd.f32 %v266_v38, %v731_v50  ;;  %v335_v45 = vstv %s841_s24  ;;  %v345_v46 = vstv %s843_s25  ;;  %v330_v47 = vmax.f32 %v326_v37, 0.0 }
  0x66   :  { %v331_v44 = vmax.f32 %v327_v59, 0.0  ;;  %v332_v48 = vmax.f32 %v328_v40, 0.0  ;;  %v333_v52 = vmax.f32 %v329_v61, 0.0  ;;  %v874_v53 = vadd.f32 %v267_v39, %v733_v51 }
  0x67   :  { %v877_v49 = vadd.f32 %v300_v36, %v746_v62  ;;  %v880_v50 = vadd.f32 %v301_v8, %v748_v63  ;;  %v883_v58 = vadd.f32 %v302_v57, %v750_v60  ;;  %v886_v38 = vadd.f32 %v303_v19, %v755_v9 }
  0x68   :  { %v336_v54 = vmul.f32 %v335_v45, %v330_v47  ;;  %v346_v55 = vmul.f32 %v345_v46, %v611_v0  ;;  %v347_v56 = vmul.f32 %v345_v46, %v616_v1  ;;  %v348_v51 = vmul.f32 %v345_v46, %v621_v2 }
  0x69   :  { %v349_v62 = vmul.f32 %v345_v46, %v626_v3  ;;  %v351_v39 = vstv %s853_s26  ;;  %v381_v21 = vstv %s855_s1  ;;  %v337_v63 = vmul.f32 %v335_v45, %v331_v44 }
  0x6a   :  { %v338_v10 = vmul.f32 %v335_v45, %v332_v48  ;;  %v339_v11 = vmul.f32 %v335_v45, %v333_v52  ;;  %v361_v60 = vstv %s857_s4  ;;  %v352_v9 = vmul.f32 %v631_v4, %v351_v39 }
  0x6b   :  { %v353_v12 = vmul.f32 %v638_v5, %v351_v39  ;;  %v354_v13 = vmul.f32 %v643_v6, %v351_v39  ;;  %v355_v14 = vmul.f32 %v648_v7, %v351_v39  ;;  %v340_v15 = vadd.f32 %v336_v54, %v772_v26 }
  0x6c   :  { %v371_v16 = vstv %s859_s0  ;;  %v382_v20 = vmul.f32 %v381_v21, %v611_v0  ;;  %v383_v24 = vmul.f32 %v381_v21, %v616_v1  ;;  %v356_v25 = vadd.f32 %v352_v9, %v346_v55 }
  0x6d   :  { %v357_v28 = vadd.f32 %v353_v12, %v347_v56  ;;  %v358_v27 = vadd.f32 %v354_v13, %v348_v51  ;;  %v359_v29 = vadd.f32 %v355_v14, %v349_v62  ;;  %v384_v30 = vmul.f32 %v381_v21, %v621_v2 }
  0x6e   :  { %v385_v34 = vmul.f32 %v381_v21, %v626_v3  ;;  %v387_v35 = vstv %s869_s27  ;;  %v397_v36 = vstv %s871_s28  ;;  %v362_v8 = vadd.f32 %v361_v60, %v356_v25 }
  0x6f   :  { %v363_v57 = vadd.f32 %v361_v60, %v357_v28  ;;  %v364_v26 = vadd.f32 %v361_v60, %v358_v27  ;;  %v365_v19 = vadd.f32 %v361_v60, %v359_v29  ;;  %v388_v0 = vmul.f32 %v631_v4, %v387_v35 }
  0x70   :  { %v389_v1 = vmul.f32 %v638_v5, %v387_v35  ;;  %v390_v37 = vmul.f32 %v643_v6, %v387_v35  ;;  %v391_v59 = vmul.f32 %v648_v7, %v387_v35  ;;  %v366_v40 = vmax.f32 %v362_v8, 0.0 }
  0x71   :  { %v367_v61 = vmax.f32 %v363_v57, 0.0  ;;  %v368_v45 = vmax.f32 %v364_v26, 0.0  ;;  %v369_v2 = vmax.f32 %v365_v19, 0.0  ;;  %v392_v3 = vadd.f32 %v388_v0, %v382_v20 }
  0x72   :  { %v393_v46 = vadd.f32 %v389_v1, %v383_v24  ;;  %v394_v47 = vadd.f32 %v390_v37, %v384_v30  ;;  %v395_v44 = vadd.f32 %v391_v59, %v385_v34  ;;  %v372_v48 = vmul.f32 %v371_v16, %v366_v40 }
  0x73   :  { %v373_v52 = vmul.f32 %v371_v16, %v367_v61  ;;  %v374_v54 = vmul.f32 %v371_v16, %v368_v45  ;;  %v375_v55 = vmul.f32 %v371_v16, %v369_v2  ;;  %v398_v4 = vadd.f32 %v397_v36, %v392_v3 }
  0x74   :  { %v399_v56 = vadd.f32 %v397_v36, %v393_v46  ;;  %v400_v5 = vadd.f32 %v397_v36, %v394_v47  ;;  %v401_v51 = vadd.f32 %v397_v36, %v395_v44  ;;  %v341_v6 = vadd.f32 %v337_v63, %v798_v22 }
  0x75   :  { %v342_v7 = vadd.f32 %v338_v10, %v801_v23  ;;  %v343_v62 = vadd.f32 %v339_v11, %v810_v31  ;;  %v407_v39 = vstv %s903_s29  ;;  %v402_v21 = vmax.f32 %v398_v4, 0.0 }
  0x76   :  { %v403_v60 = vmax.f32 %v399_v56, 0.0  ;;  %v404_v9 = vmax.f32 %v400_v5, 0.0  ;;  %v405_v12 = vmax.f32 %v401_v51, 0.0  ;;  %v376_v13 = vadd.f32 %v372_v48, %v813_v17 }
  0x77   :  { %v377_v14 = vadd.f32 %v373_v52, %v816_v18  ;;  %v378_v16 = vadd.f32 %v374_v54, %v819_v32  ;;  %v379_v20 = vadd.f32 %v375_v55, %v822_v33  ;;  %v408_v24 = vmul.f32 %v407_v39, %v402_v21 }
  0x78   :  { %v409_v25 = vmul.f32 %v407_v39, %v403_v60  ;;  %v410_v22 = vmul.f32 %v407_v39, %v404_v9  ;;  %v411_v63 = vmul.f32 %v407_v39, %v405_v12  ;;  %v420_v23 = vadd.f32 %v340_v15, %v877_v49 }
  0x79   :  { %v421_v31 = vadd.f32 %v341_v6, %v880_v50  ;;  %v422_v10 = vadd.f32 %v342_v7, %v883_v58  ;;  %v423_v11 = vadd.f32 %v343_v62, %v886_v38  ;;  %v412_v17 = vadd.f32 %v408_v24, %v836_v43 }
  0x7a   :  { %v413_v18 = vadd.f32 %v409_v25, %v862_v41  ;;  %v414_v32 = vadd.f32 %v410_v22, %v865_v42  ;;  %v415_v33 = vadd.f32 %v411_v63, %v874_v53 }
  0x7b   :  { %v416_v28 = vadd.f32 %v412_v17, %v376_v13 }
  0x7c   :  { %v417_v27 = vadd.f32 %v413_v18, %v377_v14  ;;  %v418_v29 = vadd.f32 %v414_v32, %v378_v16  ;;  %v419_v30 = vadd.f32 %v415_v33, %v379_v20 }
  0x7d   :  { %v424_v34 = vadd.f32 %v420_v23, %v416_v28 }
  0x7e   :  { %v425_v49 = vadd.f32 %v421_v31, %v417_v27  ;;  %v426_v15 = vadd.f32 %v422_v10, %v418_v29  ;;  %v427_v50 = vadd.f32 %v423_v11, %v419_v30 }
  0x7f   :  { %v503_v35 = vmul.f32 -1.442695, %v424_v34 }
  0x80   :  { %v504_v58 = vmul.f32 -1.442695, %v425_v49  ;;  %v505_v36 = vmul.f32 -1.442695, %v426_v15  ;;  %v506_v38 = vmul.f32 -1.442695, %v427_v50 }
  0x81   :  { %510 = vpow2.f32 %v503_v35 }
  0x82   :  { %512 = vpow2.f32 %v504_v58 }
  0x83   :  { %514 = vpow2.f32 %v505_v36 }
  0x84   :  { %516 = vpow2.f32 %v506_v38 }
  0x8e   :  { %v511_v43 = vpop.eup %510 }
  0x8f   :  { %v513_v41 = vpop.eup %512  ;;  %v440_v42 = vadd.f32 1.0, %v511_v43 }
  0x90   :  { %v515_v53 = vpop.eup %514  ;;  %v441_v8 = vadd.f32 1.0, %v513_v41 }
  0x91   :  { %v517_v57 = vpop.eup %516  ;;  %v442_v26 = vadd.f32 1.0, %v515_v53  ;;  %518 = vrcp.f32 %v440_v42 }
  0x92   :  { %v443_v19 = vadd.f32 1.0, %v517_v57  ;;  %520 = vrcp.f32 %v441_v8 }
  0x93   :  { %522 = vrcp.f32 %v442_v26 }
  0x94   :  { %524 = vrcp.f32 %v443_v19 }
  0x9e   :  { %v519_v0 = vpop.eup %518 }
  0x9f   :  { %v521_v1 = vpop.eup %520  ;;  %452 = vst [vmem:[%s946_s5] sm:$0xff] %v519_v0 }
  0xa0   :  { %v523_v37 = vpop.eup %522  ;;  %453 = vst [vmem:[%s946_s5 + $0x8] sm:$0xff] %v521_v1 }
  0xa1   :  { %v525_v59 = vpop.eup %524  ;;  %454 = vst [vmem:[%s946_s5 + $0x10] sm:$0xff] %v523_v37 }
  0xa2   :  { %455 = vst [vmem:[%s946_s5 + $0x18] sm:$0xff] %v525_v59 }
  0xa3   :  { %460 = vsyncpa [#allocation4], 1 }
  0xa4   :  { %461 = vsyncpa [#allocation6], 1 }

</bundles_post_ra>
